<compile_context>
chip_gen: v7x
topology: tpu7x:2x2x1
jax: 0.10.0
libtpu: 0.0.40
codegen_flags: <defaults>
</compile_context>

<pallas_src>
import math
import functools

import jax
import jax.numpy as jnp
from jax.experimental import pallas as pl
from jax.experimental.pallas import tpu as pltpu


def _tile(dim, candidates):
    """Largest candidate that evenly divides dim, else the full dim (always a divisor)."""
    for c in candidates:
        if dim >= c and dim % c == 0:
            return c
    return dim


# ---------------------------------------------------------------------------
# Kernel 1: tiled linear projection  y = x @ W^T   (W stored PyTorch-style (Dout, Din))
# ---------------------------------------------------------------------------
def _linear_kernel(x_ref, w_ref, o_ref, acc_ref):
    @pl.when(pl.program_id(2) == 0)
    def _init():
        acc_ref[...] = jnp.zeros(acc_ref.shape, jnp.float32)

    # x:(tm,tk) . w:(tn,tk), contracting the last dims -> (tm,tn).
    # W is consumed in its stored layout; no transpose inside the kernel.
    acc_ref[...] += jax.lax.dot_general(
        x_ref[...], w_ref[...],
        dimension_numbers=(((1,), (1,)), ((), ())),
        preferred_element_type=jnp.float32)

    @pl.when(pl.program_id(2) == pl.num_programs(2) - 1)
    def _store():
        o_ref[...] = acc_ref[...].astype(o_ref.dtype)


def pallas_linear(x, w):
    """x: (M, Din) f32, w: (Dout, Din) f32 [PyTorch nn.Linear layout] -> (M, Dout) f32."""
    M, Din = x.shape
    Dout, _ = w.shape
    tm = _tile(M, (256, 128, 64, 32, 16, 8))      # second-minor: multiple of 8 or full
    tn = _tile(Dout, (512, 256, 128))             # lane dim: multiple of 128 or full
    tk = _tile(Din, (512, 256, 128))              # lane dim: multiple of 128 or full
    grid = (M // tm, Dout // tn, Din // tk)
    return pl.pallas_call(
        _linear_kernel,
        out_shape=jax.ShapeDtypeStruct((M, Dout), jnp.float32),
        grid_spec=pltpu.PrefetchScalarGridSpec(
            num_scalar_prefetch=0,
            grid=grid,
            in_specs=[
                pl.BlockSpec((tm, tk), lambda i, j, k: (i, k)),
                pl.BlockSpec((tn, tk), lambda i, j, k: (j, k)),
            ],
            out_specs=pl.BlockSpec((tm, tn), lambda i, j, k: (i, j)),
            scratch_shapes=[pltpu.VMEM((tm, tn), jnp.float32)],
        ),
        compiler_params=pltpu.CompilerParams(
            dimension_semantics=("parallel", "parallel", "arbitrary")),
    )(x, w)


# ---------------------------------------------------------------------------
# Kernel 2: flash-style multi-head attention.
#   q: (B, Lq, H*Dh), k/v: (B, Lk, H*Dh)  ->  out: (B, Lq, H*Dh)
#   Head split/merge happens inside the kernel on lane slices of the H*Dh axis,
#   so the PyTorch apart_input / concat_output transposes never touch HBM.
# ---------------------------------------------------------------------------
def _mha_kernel(q_ref, k_ref, v_ref, o_ref, m_ref, l_ref, acc_ref,
                *, num_heads, dim_heads, scale):
    ki = pl.program_id(2)

    @pl.when(ki == 0)
    def _init():
        m_ref[...] = jnp.full(m_ref.shape, -jnp.inf, jnp.float32)
        l_ref[...] = jnp.zeros(l_ref.shape, jnp.float32)
        acc_ref[...] = jnp.zeros(acc_ref.shape, jnp.float32)

    # Fold 1/sqrt(Dh) into q (tq*H*Dh elements) instead of the (tq,tk) score matrices.
    q = q_ref[0] * scale          # (tq, H*Dh)
    k = k_ref[0]                  # (tk, H*Dh)
    v = v_ref[0]                  # (tk, H*Dh)

    for h in range(num_heads):    # static unroll over heads
        lo, hi = h * dim_heads, (h + 1) * dim_heads
        qh, kh, vh = q[:, lo:hi], k[:, lo:hi], v[:, lo:hi]
        # q @ k^T without materializing k.T: contract the last dims on the MXU.
        s = jax.lax.dot_general(
            qh, kh, dimension_numbers=(((1,), (1,)), ((), ())),
            preferred_element_type=jnp.float32)                       # (tq, tk)
        m_prev = m_ref[h]                                             # (tq, 1)
        m_new = jnp.maximum(m_prev, jnp.max(s, axis=-1, keepdims=True))
        alpha = jnp.exp(m_prev - m_new)
        p = jnp.exp(s - m_new)
        l_ref[h] = alpha * l_ref[h] + jnp.sum(p, axis=-1, keepdims=True)
        acc_ref[:, lo:hi] = alpha * acc_ref[:, lo:hi] + jnp.dot(
            p, vh, preferred_element_type=jnp.float32)
        m_ref[h] = m_new

    @pl.when(ki == pl.num_programs(2) - 1)
    def _finalize():
        for h in range(num_heads):
            lo, hi = h * dim_heads, (h + 1) * dim_heads
            inv = pl.reciprocal(l_ref[h], approx=True)   # EUP slot, effectively free
            acc_ref[:, lo:hi] = acc_ref[:, lo:hi] * inv
        # single lane-dense store of the (tq, H*Dh) output slab
        o_ref[0] = acc_ref[...].astype(o_ref.dtype)


def pallas_mha(q, k, v, *, num_heads, dim_heads):
    B, Lq, HDh = q.shape
    _, Lk, _ = k.shape
    assert HDh == num_heads * dim_heads
    tq = _tile(Lq, (128, 64, 32, 16, 8))
    tk = _tile(Lk, (256, 128, 64, 32, 16, 8))
    scale = 1.0 / math.sqrt(dim_heads)
    kernel = functools.partial(_mha_kernel, num_heads=num_heads,
                               dim_heads=dim_heads, scale=scale)
    return pl.pallas_call(
        kernel,
        out_shape=jax.ShapeDtypeStruct((B, Lq, HDh), jnp.float32),
        grid_spec=pltpu.PrefetchScalarGridSpec(
            num_scalar_prefetch=0,
            grid=(B, Lq // tq, Lk // tk),                # KV (reduction) axis last
            in_specs=[
                pl.BlockSpec((1, tq, HDh), lambda b, qi, ki: (b, qi, 0)),
                pl.BlockSpec((1, tk, HDh), lambda b, qi, ki: (b, ki, 0)),
                pl.BlockSpec((1, tk, HDh), lambda b, qi, ki: (b, ki, 0)),
            ],
            out_specs=pl.BlockSpec((1, tq, HDh), lambda b, qi, ki: (b, qi, 0)),
            scratch_shapes=[
                pltpu.VMEM((num_heads, tq, 1), jnp.float32),   # running max m
                pltpu.VMEM((num_heads, tq, 1), jnp.float32),   # running sum l
                pltpu.VMEM((tq, HDh), jnp.float32),            # output accumulator
            ],
        ),
        compiler_params=pltpu.CompilerParams(
            dimension_semantics=("parallel", "parallel", "arbitrary")),
    )(q, k, v)


# ---------------------------------------------------------------------------
# Full module forward
# ---------------------------------------------------------------------------
def sequence_mha_forward(queries, keys, values, params, *, num_heads, dim_heads):
    B, Lq, _ = queries.shape
    Lk = keys.shape[1]
    DH = num_heads * dim_heads

    q = pallas_linear(queries.reshape(B * Lq, -1), params["w_q"]).reshape(B, Lq, DH)
    if keys is values:
        # Same activation for K and V: one HBM read / one pallas_call with fused weights.
        w_kv = jnp.concatenate([params["w_k"], params["w_v"]], axis=0)
        kv = pallas_linear(keys.reshape(B * Lk, -1), w_kv)
        k = kv[:, :DH].reshape(B, Lk, DH)
        v = kv[:, DH:].reshape(B, Lk, DH)
    else:
        k = pallas_linear(keys.reshape(B * Lk, -1), params["w_k"]).reshape(B, Lk, DH)
        v = pallas_linear(values.reshape(B * Lk, -1), params["w_v"]).reshape(B, Lk, DH)

    # attention output already lands in concat_output layout (B, Lq, H*Dh)
    att = pallas_mha(q, k, v, num_heads=num_heads, dim_heads=dim_heads)

    out = pallas_linear(att.reshape(B * Lq, DH), params["w_o"])
    return out.reshape(B, Lq, -1)


# ---------------------------------------------------------------------------
# Pure-JAX reference (mirrors the PyTorch module exactly)
# ---------------------------------------------------------------------------
def reference_forward(queries, keys, values, params, *, num_heads, dim_heads):
    B, Lq, _ = queries.shape
    Lk = keys.shape[1]
    H, Dh = num_heads, dim_heads
    q = queries @ params["w_q"].T
    k = keys @ params["w_k"].T
    v = values @ params["w_v"].T

    def apart(x, L):
        return x.reshape(B, L, H, Dh).transpose(0, 2, 1, 3).reshape(B * H, L, Dh)

    qh, kh, vh = apart(q, Lq), apart(k, Lk), apart(v, Lk)
    s = jnp.einsum("bqd,bkd->bqk", qh, kh) / math.sqrt(Dh)
    p = jax.nn.softmax(s, axis=-1)
    att = jnp.einsum("bqk,bkd->bqd", p, vh)
    att = att.reshape(B, H, Lq, Dh).transpose(0, 2, 1, 3).reshape(B, Lq, H * Dh)
    return att @ params["w_o"].T


# ---------------------------------------------------------------------------
# Deterministic parameter init (nn.Linear default: U(-1/sqrt(fan_in), 1/sqrt(fan_in)))
# ---------------------------------------------------------------------------
def init_params(key, dim_q, dim_k, dim_v, num_heads, dim_heads, dim_out):
    dim_hiddens = num_heads * dim_heads
    ks = jax.random.split(key, 4)

    def lin(k, dout, din):
        bound = 1.0 / math.sqrt(din)
        return jax.random.uniform(k, (dout, din), jnp.float32, -bound, bound)

    return {
        "w_q": lin(ks[0], dim_hiddens, dim_q),
        "w_k": lin(ks[1], dim_hiddens, dim_k),
        "w_v": lin(ks[2], dim_hiddens, dim_v),
        "w_o": lin(ks[3], dim_out, dim_hiddens),
    }


def _run_case(key, *, B, Lq, Lk, dim_q, dim_k, dim_v, num_heads, dim_heads, dim_out):
    k_param, k_q, k_k, k_v = jax.random.split(key, 4)
    params = init_params(k_param, dim_q, dim_k, dim_v, num_heads, dim_heads, dim_out)
    queries = jax.random.normal(k_q, (B, Lq, dim_q), jnp.float32)
    keys = jax.random.normal(k_k, (B, Lk, dim_k), jnp.float32)
    values = jax.random.normal(k_v, (B, Lk, dim_v), jnp.float32)

    out = sequence_mha_forward(queries, keys, values, params,
                               num_heads=num_heads, dim_heads=dim_heads)
    out = jax.block_until_ready(out)
    ref = reference_forward(queries, keys, values, params,
                            num_heads=num_heads, dim_heads=dim_heads)
    assert out.shape == (B, Lq, dim_out), out.shape
    err = float(jnp.max(jnp.abs(out - ref)))
    assert err < 1e-2, err
    return err


if __name__ == "__main__":
    root = jax.random.PRNGKey(0)
    key1, key2 = jax.random.split(root)

    # small shape consistent with the module's forward
    _run_case(key1, B=2, Lq=8, Lk=8, dim_q=16, dim_k=16, dim_v=16,
              num_heads=4, dim_heads=8, dim_out=16)

    # moderate shape that exercises the tiled / accumulating grid paths
    # (multiple M- and K-tiles in the projections, multiple Q- and KV-blocks in attention)
    _run_case(key2, B=2, Lq=384, Lk=384, dim_q=384, dim_k=384, dim_v=384,
              num_heads=8, dim_heads=32, dim_out=256)

    print("KERNEL_OK")
</pallas_src>

<mosaic_0001>
module attributes {stable_mosaic.version = 11 : i64} {
  func.func @_linear_kernel(%arg0: i32, %arg1: i32, %arg2: i32, %arg3: memref<16x16xf32, #tpu.memory_space<vmem>>, %arg4: memref<32x16xf32, #tpu.memory_space<vmem>>, %arg5: memref<16x32xf32, #tpu.memory_space<vmem>>, %arg6: memref<16x32xf32, #tpu.memory_space<vmem>>) attributes {dimension_semantics = [#tpu.dimension_semantics<parallel>, #tpu.dimension_semantics<parallel>, #tpu.dimension_semantics<arbitrary>], iteration_bounds = array<i64: 1, 1, 1>, scalar_prefetch = 0 : i64, scratch_operands = 1 : i64, tpu.core_type = #tpu.core_type<tc>, window_params = [{transform_indices = @transform_0, window_bounds = array<i64: 16, 16>}, {transform_indices = @transform_1, window_bounds = array<i64: 32, 16>}, {transform_indices = @transform_2, window_bounds = array<i64: 16, 32>}]} {
    %c0_i32 = arith.constant 0 : i32
    %0 = arith.cmpi eq, %arg2, %c0_i32 : i32
    %1 = arith.extui %0 : i1 to i32
    %c0_i32_0 = arith.constant 0 : i32
    %2 = arith.cmpi ne, %1, %c0_i32_0 : i32
    scf.if %2 {
      %cst_10 = arith.constant 0.000000e+00 : f32
      %12 = vector.broadcast %cst_10 : f32 to vector<16x32xf32>
      %c0_11 = arith.constant 0 : index
      %c0_12 = arith.constant 0 : index
      %13 = vector.load %arg6[%c0_11, %c0_12] : memref<16x32xf32, #tpu.memory_space<vmem>>, vector<16x32xf32>
      tpu.vector_store %arg6[%c0_11, %c0_12], %12 {strides = array<i32>} : memref<16x32xf32, #tpu.memory_space<vmem>>, vector<16x32xf32>,
    } else {
    }
    %c0 = arith.constant 0 : index
    %c0_1 = arith.constant 0 : index
    %3 = vector.load %arg6[%c0, %c0_1] : memref<16x32xf32, #tpu.memory_space<vmem>>, vector<16x32xf32>
    %c0_2 = arith.constant 0 : index
    %c0_3 = arith.constant 0 : index
    %4 = vector.load %arg3[%c0_2, %c0_3] : memref<16x16xf32, #tpu.memory_space<vmem>>, vector<16x16xf32>
    %c0_4 = arith.constant 0 : index
    %c0_5 = arith.constant 0 : index
    %5 = vector.load %arg4[%c0_4, %c0_5] : memref<32x16xf32, #tpu.memory_space<vmem>>, vector<32x16xf32>
    %cst = arith.constant dense<0.000000e+00> : vector<16x32xf32>
    %6 = tpu.matmul %4, %5, %cst {dimension_numbers = #tpu.dot_dimension_numbers<[1], [1], [0], [0], [0, 0, 1, 0], [], []>} : vector<16x16xf32>, vector<32x16xf32>, vector<16x32xf32> -> vector<16x32xf32>
    %7 = arith.addf %3, %6 : vector<16x32xf32>
    %c0_6 = arith.constant 0 : index
    %c0_7 = arith.constant 0 : index
    %8 = vector.load %arg6[%c0_6, %c0_7] : memref<16x32xf32, #tpu.memory_space<vmem>>, vector<16x32xf32>
    tpu.vector_store %arg6[%c0_6, %c0_7], %7 {strides = array<i32>} : memref<16x32xf32, #tpu.memory_space<vmem>>, vector<16x32xf32>,
    %c0_i32_8 = arith.constant 0 : i32
    %9 = arith.cmpi eq, %arg2, %c0_i32_8 : i32
    %10 = arith.extui %9 : i1 to i32
    %c0_i32_9 = arith.constant 0 : i32
    %11 = arith.cmpi ne, %10, %c0_i32_9 : i32
    scf.if %11 {
      %c0_10 = arith.constant 0 : index
      %c0_11 = arith.constant 0 : index
      %12 = vector.load %arg6[%c0_10, %c0_11] : memref<16x32xf32, #tpu.memory_space<vmem>>, vector<16x32xf32>
      %c0_12 = arith.constant 0 : index
      %c0_13 = arith.constant 0 : index
      %13 = vector.load %arg5[%c0_12, %c0_13] : memref<16x32xf32, #tpu.memory_space<vmem>>, vector<16x32xf32>
      tpu.vector_store %arg5[%c0_12, %c0_13], %12 {strides = array<i32>} : memref<16x32xf32, #tpu.memory_space<vmem>>, vector<16x32xf32>,
    } else {
    }
    return
  }
  func.func @transform_0(%arg0: i32, %arg1: i32, %arg2: i32) -> (i32, i32) {
    %c0_i32 = arith.constant 0 : i32
    return %arg0, %arg2 : i32, i32
  }
  func.func @transform_1(%arg0: i32, %arg1: i32, %arg2: i32) -> (i32, i32) {
    %c0_i32 = arith.constant 0 : i32
    return %arg1, %arg2 : i32, i32
  }
  func.func @transform_2(%arg0: i32, %arg1: i32, %arg2: i32) -> (i32, i32) {
    %c0_i32 = arith.constant 0 : i32
    return %arg0, %arg1 : i32, i32
  }
}

</mosaic_0001>

<bundles_post_ra>
// kernel: tpu_custom_call.1
= control target key start
LH: loop header
LB: loop body
LE: loop exit
PB: predicated region body
PF: predicated region fallthrough
CT: control target
= control target key end

     0   :  { %vm27_vm0 = vcmask 130048   ;;  %vm16_vm1 = vcmask 261120   ;;  %v212_v6 = vmov 0.0   ;;  %s271_s0 = inlined_call_operand.vmem [shape: f32[16,16], index: 0, kind: input, shape index: {}]   ;;  %s272_s1 = inlined_call_operand.vmem [shape: f32[32,16], index: 1, kind: input, shape index: {}]   ;;  %s273_s2 = inlined_call_operand.hbm [shape: f32[16,32], index: 2, kind: output, shape index: {}]  }
   0x1   :  { %v23_v0 = vld [vmem:[%s272_s1] sm:$0xff]  ;;  %v24_v1 = vld [vmem:[%s272_s1 + $0x8] sm:$0xff]  ;;  %v25_v2 = vld [vmem:[%s272_s1 + $0x10] sm:$0xff]  ;;  %18 = vst.msk [vmem:[#allocation2 + $0x8] sm:$0xff] %vm16_vm1, %v212_v6 }
   0x2   :  { %v172_v3 = vpack.c.bf16 %v24_v1, %v23_v0  ;;  %vm173_vm2 = vmpackc.low %vm27_vm0, %vm27_vm0  ;;  %v26_v4 = vld [vmem:[%s272_s1 + $0x18] sm:$0xff]  ;;  %v21_v5 = vld [vmem:[%s271_s0] sm:$0xff]  ;;  %17 = vst.msk [vmem:[#allocation2] sm:$0xff] %vm16_vm1, %v212_v6 }
   0x3   :  { %v178_v7 = vpack.c.bf16 %v26_v4, %v25_v2  ;;  %169 = vmatprep.mubr.msk.f32.mxu0 %vm27_vm0, %v21_v5 }
   0x4   :  { %7 = vsyncpa [#allocation4], 0  ;;  %174 = vmatprep.subr.msk.bf16.mxu0 %vm173_vm2, %v172_v3  ;;  %v22_v8 = vld [vmem:[%s271_s0 + $0x8] sm:$0xff]  ;;  %s213_s1 = smov [#allocation3]  }
   0x5   :  { %177 = vmatpush3.bf16.xpose.msk.msra.mxu0 %vm173_vm2, %v172_v3  ;;  %s138_s21 = sshll.u32 %s213_s1, 4  ;;  %s139_s21 = int_to_ptr.vmem [resolvable:$true] %s138_s21 }
   0x6   :  { %180 = vmatprep.subr.msk.bf16.mxu0 %vm173_vm2, %v178_v7  ;;  %s188_s0 = scalar_lea.vmem %s139_s21, 256  ;;  %p193_p1 = scmp.lt.s32.totalorder %s139_s21, %s139_s21 }
   0x7   :  { %p189_p0 = scmp.ne.s32.totalorder %s139_s21, %s188_s0  ;;  %p194_p2 = scmp.lt.s32.totalorder %s188_s0, %s188_s0 }
   0x8   :  { %v20_v9 = vld [vmem:[#allocation2 + $0x8] sm:$0xff] }
   0x9   :  { %v19_v10 = vld [vmem:[#allocation2] sm:$0xff]  ;;  %p195_p3 = por %p194_p2, %p193_p1 }
   0xb   :  { %p196_p4 = pnand %p195_p3, %p189_p0 }
   0xd   :  { %183 = vmatpush3.bf16.xpose.msk.msra.mxu0 %vm173_vm2, %v178_v7 }
  0x14   :  { %170 = vmatmul.mubr.msk.f32.vlgmr.msra.gmra.mrb[0].mxu0 %vm27_vm0, %v22_v8 }
  0xe7   :  { %v171_v11 = vpop.f32.mrb[0].mxu0 }
  0xe8   :  { %v122_v12 = vadd.f32 %v171_v11, %v20_v9  ;;  %v112_v13 = vpop.f32.mrb[1].mxu0 }
  0xe9   :  { %v121_v14 = vadd.f32 %v112_v13, %v19_v10 }
  0xea   :  { %125 = vst.msk [vmem:[#allocation2 + $0x8] sm:$0xff] %vm16_vm1, %v122_v12 }
  0xeb   :  { %124 = vst.msk [vmem:[#allocation2] sm:$0xff] %vm16_vm1, %v121_v14 }
  0xf1   :  { %v130_v15 = vld [vmem:[#allocation2 + $0x8] sm:$0xff] }
  0xf2   :  { %v129_v16 = vld [vmem:[#allocation2] sm:$0xff]  ;;  %132 = vst.msk [vmem:[#allocation3 + $0x8] sm:$0xff] %vm16_vm1, %v130_v15 }
  0xf3   :  { %131 = vst.msk [vmem:[#allocation3] sm:$0xff] %vm16_vm1, %v129_v16 }
  0xf4   :  { %199 = shalt.err (!%p196_p4)
}
  0xf5   :  { %s200_s24 = scalar_lea.hbm %s273_s2, 256 }
  0xf6   :  { %p201_p5 = scmp.ne.s32.totalorder %s273_s2, %s200_s24  ;;  %p204_p6 = scmp.lt.u32.totalorder %s200_s24, %s273_s2 }
  0xf8   :  { %p206_p7 = pnand %p204_p6, %p201_p5 }
  0xfa   :  { %209 = shalt.err (!%p206_p7)
}
  0xfb   :  { %s214_s29 = smov 128   ;;  %s215_s30 = smov 8  }
  0xfc   :  { %144 = dma.vmem_to_hbm [thread:$0]  %s139_s21, 256, %s273_s2, [#allocation4], %s214_s29, %s214_s29, %s215_s30  }
  0xfd   :  { %210 = dma.done.wait [#allocation4], 256  }
  0xfe   :  { %211 = vsyncadd [#allocation4], 4294967040 }
  0xff   :  { %148 = vsyncpa [#allocation4], 1 }

</bundles_post_ra>
